<compile_context>
chip_gen: v6e
topology: v6e:2x2x1
jax: 0.10.0
libtpu: 0.0.40
codegen_flags: <defaults>
</compile_context>

<pallas_src>
import functools

import jax
import jax.numpy as jnp
from jax import lax
from jax.experimental import pallas as pl
from jax.experimental.pallas import tpu as pltpu

BN_EPS = 1e-5
LANE = 128
SUBLANE = 8


def term_kernel(x_ref, w1_ref, b1_ref, gamma_ref, beta_ref, w2_ref, b2_ref,
                fused_ref, *, hidden_size, hp, valid_b):
    # dropout(p=0) == identity
    x = x_ref[...]                                               # (Bp, F)

    # linear1 + tanh.  w1/b1 are zero-padded to Hp lanes, so padded lanes carry
    # tanh(0) = 0 and never affect the result.
    h = jnp.dot(x.astype(w1_ref.dtype), w1_ref[...],
                preferred_element_type=jnp.float32)
    h = jnp.tanh(h + b1_ref[...])                                # (Bp, Hp) f32

    bp = h.shape[0]
    if valid_b != bp:
        # Batch was padded to a sublane multiple: exclude padded rows from the stats.
        row = lax.broadcasted_iota(jnp.int32, h.shape, 0)
        hm = jnp.where(row < valid_b, h, 0.0)
    else:
        hm = h

    # BatchNorm1d, training-mode batch statistics (biased variance, eps=1e-5),
    # single pass: var = E[h^2] - E[h]^2.  gamma*rsqrt folded into scale/shift.
    inv_b = 1.0 / valid_b
    mean = jnp.sum(hm, axis=0, keepdims=True) * inv_b            # (1, Hp)
    mean_sq = jnp.sum(hm * hm, axis=0, keepdims=True) * inv_b    # (1, Hp)
    var = mean_sq - mean * mean
    scale = gamma_ref[...] * lax.rsqrt(var + BN_EPS)             # 0 in padded lanes
    shift = beta_ref[...] - mean * scale
    hidden = h * scale + shift                                   # (Bp, Hp)

    # linear2 (H -> 1) as a lane reduction: w2 is a zero-padded (1, Hp) row.
    y = jnp.sum(hidden * w2_ref[...], axis=-1, keepdims=True)    # (Bp, 1)
    out = jnp.tanh(y + b2_ref[0, 0])                             # (Bp, 1)

    slab = fused_ref.shape[1]
    if slab == hp:
        # H is not a multiple of 128: scalar output broadcast into lanes [H, Hp).
        lane = lax.broadcasted_iota(jnp.int32, fused_ref.shape, 1)
        fused_ref[...] = jnp.where(lane < hidden_size, hidden, out)
    else:
        # H is a multiple of 128: two unmasked lane-dense stores.
        fused_ref[:, :hp] = hidden
        fused_ref[:, hp:] = jnp.broadcast_to(out, (bp, slab - hp))


def prepare_params(w1, b1, gamma, beta, w2_row, b2, *, matmul_dtype=jnp.float32):
    """One-time layout plumbing: zero-pad the feature axis to Hp = cdiv(H,128)*128.

    Call once and reuse the result for every forward (do NOT call per step).
    Set matmul_dtype=jnp.bfloat16 for large F*H to cut MXU passes / w1 DMA.
    """
    H = w1.shape[1]
    hp = pl.cdiv(H, LANE) * LANE
    pad = hp - H
    w1_p = jnp.pad(w1, ((0, 0), (0, pad))).astype(matmul_dtype)
    b1_p = jnp.pad(b1, ((0, 0), (0, pad)))
    gamma_p = jnp.pad(gamma, ((0, 0), (0, pad)))     # zero pad -> padded lanes exactly 0
    beta_p = jnp.pad(beta, ((0, 0), (0, pad)))
    w2_p = jnp.pad(w2_row, ((0, 0), (0, pad)))
    return (w1_p, b1_p, gamma_p, beta_p, w2_p, b2)


def term_module_forward(x, w1_p, b1_p, gamma_p, beta_p, w2_p, b2, *,
                        hidden_size, return_fused=False):
    """x: (B, F); padded params from prepare_params().

    Returns (out, hidden) matching the PyTorch module's (x, hidden) return, or the
    lane-padded fused slab plus the output-column index when return_fused=True.
    """
    B, F = x.shape
    H = hidden_size
    hp = w1_p.shape[1]
    bp = pl.cdiv(B, SUBLANE) * SUBLANE
    if bp != B:
        x = jnp.pad(x, ((0, bp - B), (0, 0)))

    # Output slab: hidden in lanes [0, H); the scalar output broadcast into [H, Hp),
    # or into a dedicated extra 128-lane tile when H is already a multiple of 128.
    slab = hp + LANE if H == hp else hp
    out_col = hp if H == hp else H

    vmem = pl.BlockSpec(memory_space=pltpu.MemorySpace.VMEM)
    smem = pl.BlockSpec(memory_space=pltpu.MemorySpace.SMEM)

    fused = pl.pallas_call(
        functools.partial(term_kernel, hidden_size=H, hp=hp, valid_b=B),
        out_shape=jax.ShapeDtypeStruct((bp, slab), jnp.float32),
        in_specs=[vmem, vmem, vmem, vmem, vmem, vmem, smem],
        out_specs=vmem,
        cost_estimate=pl.CostEstimate(
            flops=2 * B * F * H + 12 * B * H,
            transcendentals=B * H + B,
            bytes_accessed=4 * (bp * F + F * hp + 4 * hp + 1 + bp * slab),
        ),
    )(x, w1_p, b1_p, gamma_p, beta_p, w2_p, b2)

    if return_fused:
        return fused, out_col
    out = fused[:B, out_col:out_col + 1]
    hidden = fused[:B, :H]
    return out, hidden


def init_params(key, input_size, hidden_size):
    # Mimics nn.Linear's uniform(-1/sqrt(fan_in), 1/sqrt(fan_in)) init;
    # BatchNorm affine params at PyTorch defaults (weight=1, bias=0).
    k1, k2, k3, k4 = jax.random.split(key, 4)
    lim1 = 1.0 / jnp.sqrt(input_size)
    lim2 = 1.0 / jnp.sqrt(hidden_size)
    w1 = jax.random.uniform(k1, (input_size, hidden_size), jnp.float32, -lim1, lim1)
    b1 = jax.random.uniform(k2, (1, hidden_size), jnp.float32, -lim1, lim1)
    w2_row = jax.random.uniform(k3, (1, hidden_size), jnp.float32, -lim2, lim2)
    b2 = jax.random.uniform(k4, (1, 1), jnp.float32, -lim2, lim2)
    gamma = jnp.ones((1, hidden_size), jnp.float32)
    beta = jnp.zeros((1, hidden_size), jnp.float32)
    return w1, b1, gamma, beta, w2_row, b2


def _reference(x, w1, b1, gamma, beta, w2_row, b2):
    h = jnp.tanh(x @ w1 + b1)
    mean = jnp.mean(h, axis=0, keepdims=True)
    var = jnp.mean((h - mean) ** 2, axis=0, keepdims=True)
    hidden = (h - mean) * lax.rsqrt(var + BN_EPS) * gamma + beta
    out = jnp.tanh(hidden @ w2_row.T + b2)
    return out, hidden


if __name__ == "__main__":
    B, INPUT_SIZE, HIDDEN_SIZE = 8, 16, 32
    key = jax.random.PRNGKey(0)
    kx, kp = jax.random.split(key)
    x = jax.random.normal(kx, (B, INPUT_SIZE), jnp.float32)
    raw_params = init_params(kp, INPUT_SIZE, HIDDEN_SIZE)

    # One-time parameter prep (padding hoisted out of the per-call forward).
    padded_params = jax.block_until_ready(prepare_params(*raw_params))

    fwd = jax.jit(term_module_forward, static_argnames=("hidden_size", "return_fused"))
    out, hidden = fwd(x, *padded_params, hidden_size=HIDDEN_SIZE)
    jax.block_until_ready((out, hidden))

    # shape + numeric sanity vs. a pure-JAX reference
    assert out.shape == (B, 1) and hidden.shape == (B, HIDDEN_SIZE)
    ref_out, ref_hidden = _reference(x, *raw_params)
    assert bool(jnp.allclose(out, ref_out, rtol=1e-3, atol=1e-3))
    assert bool(jnp.allclose(hidden, ref_hidden, rtol=1e-3, atol=1e-3))

    # TODO(synk): BatchNorm running_mean/running_var state updates (PyTorch training
    # bookkeeping) are intentionally not tracked; forward uses batch stats only.
    print("KERNEL_OK")
</pallas_src>

<mosaic_0001>
module attributes {stable_mosaic.version = 11 : i64} {
  func.func @term_kernel(%arg0: memref<8x16xf32, #tpu.memory_space<vmem>>, %arg1: memref<16x128xf32, #tpu.memory_space<vmem>>, %arg2: memref<1x128xf32, #tpu.memory_space<vmem>>, %arg3: memref<1x128xf32, #tpu.memory_space<vmem>>, %arg4: memref<1x128xf32, #tpu.memory_space<vmem>>, %arg5: memref<1x128xf32, #tpu.memory_space<vmem>>, %arg6: memref<1x1xf32, #tpu.memory_space<smem>>, %arg7: memref<8x128xf32, #tpu.memory_space<vmem>>) attributes {dimension_semantics = [], scalar_prefetch = 0 : i64, scratch_operands = 0 : i64, tpu.core_type = #tpu.core_type<tc>} {
    %c0 = arith.constant 0 : index
    %c0_0 = arith.constant 0 : index
    %0 = vector.load %arg0[%c0, %c0_0] : memref<8x16xf32, #tpu.memory_space<vmem>>, vector<8x16xf32>
    %c0_1 = arith.constant 0 : index
    %c0_2 = arith.constant 0 : index
    %1 = vector.load %arg1[%c0_1, %c0_2] : memref<16x128xf32, #tpu.memory_space<vmem>>, vector<16x128xf32>
    %cst = arith.constant dense<0.000000e+00> : vector<8x128xf32>
    %2 = tpu.matmul %0, %1, %cst {dimension_numbers = #tpu.dot_dimension_numbers<[1], [0], [0], [1], [0, 0, 1, 1], [], []>} : vector<8x16xf32>, vector<16x128xf32>, vector<8x128xf32> -> vector<8x128xf32>
    %c0_3 = arith.constant 0 : index
    %c0_4 = arith.constant 0 : index
    %3 = vector.load %arg2[%c0_3, %c0_4] : memref<1x128xf32, #tpu.memory_space<vmem>>, vector<1x128xf32>
    %4 = vector.broadcast %3 : vector<1x128xf32> to vector<8x128xf32>
    %5 = arith.addf %2, %4 : vector<8x128xf32>
    %6 = math.tanh %5 : vector<8x128xf32>
    %cst_5 = arith.constant dense<0.000000e+00> : vector<128xf32>
    %7 = vector.multi_reduction <add>, %6, %cst_5 [0] : vector<8x128xf32> to vector<128xf32>
    %8 = vector.shape_cast %7 : vector<128xf32> to vector<1x128xf32>
    %cst_6 = arith.constant 1.250000e-01 : f32
    %9 = vector.broadcast %cst_6 : f32 to vector<1x128xf32>
    %10 = arith.mulf %8, %9 : vector<1x128xf32>
    %11 = arith.mulf %6, %6 : vector<8x128xf32>
    %cst_7 = arith.constant dense<0.000000e+00> : vector<128xf32>
    %12 = vector.multi_reduction <add>, %11, %cst_7 [0] : vector<8x128xf32> to vector<128xf32>
    %13 = vector.shape_cast %12 : vector<128xf32> to vector<1x128xf32>
    %cst_8 = arith.constant 1.250000e-01 : f32
    %14 = vector.broadcast %cst_8 : f32 to vector<1x128xf32>
    %15 = arith.mulf %13, %14 : vector<1x128xf32>
    %16 = arith.mulf %10, %10 : vector<1x128xf32>
    %17 = arith.subf %15, %16 : vector<1x128xf32>
    %c0_9 = arith.constant 0 : index
    %c0_10 = arith.constant 0 : index
    %18 = vector.load %arg3[%c0_9, %c0_10] : memref<1x128xf32, #tpu.memory_space<vmem>>, vector<1x128xf32>
    %cst_11 = arith.constant 9.99999974E-6 : f32
    %19 = vector.broadcast %cst_11 : f32 to vector<1x128xf32>
    %20 = arith.addf %17, %19 : vector<1x128xf32>
    %21 = math.rsqrt %20 : vector<1x128xf32>
    %22 = arith.mulf %18, %21 : vector<1x128xf32>
    %c0_12 = arith.constant 0 : index
    %c0_13 = arith.constant 0 : index
    %23 = vector.load %arg4[%c0_12, %c0_13] : memref<1x128xf32, #tpu.memory_space<vmem>>, vector<1x128xf32>
    %24 = arith.mulf %10, %22 : vector<1x128xf32>
    %25 = arith.subf %23, %24 : vector<1x128xf32>
    %26 = vector.broadcast %22 : vector<1x128xf32> to vector<8x128xf32>
    %27 = arith.mulf %6, %26 : vector<8x128xf32>
    %28 = vector.broadcast %25 : vector<1x128xf32> to vector<8x128xf32>
    %29 = arith.addf %27, %28 : vector<8x128xf32>
    %c0_14 = arith.constant 0 : index
    %c0_15 = arith.constant 0 : index
    %30 = vector.load %arg5[%c0_14, %c0_15] : memref<1x128xf32, #tpu.memory_space<vmem>>, vector<1x128xf32>
    %31 = vector.broadcast %30 : vector<1x128xf32> to vector<8x128xf32>
    %32 = arith.mulf %29, %31 : vector<8x128xf32>
    %cst_16 = arith.constant dense<0.000000e+00> : vector<8xf32>
    %33 = vector.multi_reduction <add>, %32, %cst_16 [1] : vector<8x128xf32> to vector<8xf32>
    %34 = vector.shape_cast %33 : vector<8xf32> to vector<8x1xf32>
    %c0_17 = arith.constant 0 : index
    %c0_18 = arith.constant 0 : index
    %35 = memref.load %arg6[%c0_17, %c0_18] : memref<1x1xf32, #tpu.memory_space<smem>>
    %36 = vector.broadcast %35 : f32 to vector<8x1xf32>
    %37 = arith.addf %34, %36 : vector<8x1xf32>
    %38 = math.tanh %37 : vector<8x1xf32>
    %39 = tpu.iota {dimensions = array<i32: 1>} : vector<8x128xi32>
    %c32_i32 = arith.constant 32 : i32
    %40 = vector.broadcast %c32_i32 : i32 to vector<8x128xi32>
    %41 = arith.cmpi slt, %39, %40 : vector<8x128xi32>
    %42 = vector.shape_cast %38 : vector<8x1xf32> to vector<8x1xf32>
    %43 = vector.broadcast %42 : vector<8x1xf32> to vector<8x128xf32>
    %44 = arith.select %41, %29, %43 : vector<8x128xi1>, vector<8x128xf32>
    %c0_19 = arith.constant 0 : index
    %c0_20 = arith.constant 0 : index
    %45 = vector.load %arg7[%c0_19, %c0_20] : memref<8x128xf32, #tpu.memory_space<vmem>>, vector<8x128xf32>
    tpu.vector_store %arg7[%c0_19, %c0_20], %44 {strides = array<i32>} : memref<8x128xf32, #tpu.memory_space<vmem>>, vector<8x128xf32>,
    return
  }
}

</mosaic_0001>

<bundles_post_ra>
// kernel: term_module_forward.1
= control target key start
LH: loop header
LB: loop body
LE: loop exit
PB: predicated region body
PF: predicated region fallthrough
CT: control target
= control target key end

     0   :  { %13 = vsyncpa [#allocation4], 0  ;;  %s340_s0 = inlined_call_operand.hbm [shape: f32[8,16], index: 0, kind: input, shape index: {}]   ;;  %s341_s1 = inlined_call_operand.hbm [shape: f32[16,128], index: 1, kind: input, shape index: {}]   ;;  %s342_s2 = inlined_call_operand.vmem [shape: f32[1,128], index: 2, kind: input, shape index: {}]   ;;  %s343_s3 = inlined_call_operand.vmem [shape: f32[1,128], index: 3, kind: input, shape index: {}]   ;;  %s344_s4 = inlined_call_operand.vmem [shape: f32[1,128], index: 4, kind: input, shape index: {}]   ;;  %s345_s5 = inlined_call_operand.vmem [shape: f32[1,128], index: 5, kind: input, shape index: {}]   ;;  %s346_s6 = inlined_call_operand.<no memory space> [shape: f32[1,1], index: 6, kind: input, shape index: {}]   ;;  %s347_s7 = inlined_call_operand.vmem [shape: f32[8,128], index: 7, kind: output, shape index: {}]  }
   0x1   :  { %14 = vsyncpa [#allocation6], 0  ;;  %s270_s24 = smov [#allocation3]   ;;  %s271_s26 = smov [#allocation5]  }
   0x2   :  { %s21_s25 = sshll.u32 %s270_s24, 4  ;;  %s30_s27 = sshll.u32 %s271_s26, 4  ;;  %s22_s25 = int_to_ptr.vmem [resolvable:$true] %s21_s25  ;;  %s31_s27 = int_to_ptr.vmem [resolvable:$true] %s30_s27 }
   0x3   :  { %s234_s28 = scalar_lea.vmem %s22_s25, 128  ;;  %p239_p1 = scmp.lt.s32.totalorder %s22_s25, %s22_s25 }
   0x4   :  { %p235_p0 = scmp.ne.s32.totalorder %s22_s25, %s234_s28  ;;  %p240_p2 = scmp.lt.s32.totalorder %s234_s28, %s234_s28 }
   0x6   :  { %p241_p3 = por %p240_p2, %p239_p1 }
   0x8   :  { %p242_p4 = pnand %p241_p3, %p235_p0 }
   0xa   :  { %245 = shalt.err (!%p242_p4)
}
   0xb   :  { %24 = dma.hbm_to_vmem [thread:$0]  %s340_s0, 128, %s22_s25, [#allocation4]  }
   0xc   :  { %s254_s8 = scalar_lea.vmem %s31_s27, 256  ;;  %p259_p6 = scmp.lt.s32.totalorder %s31_s27, %s31_s27 }
   0xd   :  { %p255_p5 = scmp.ne.s32.totalorder %s31_s27, %s254_s8  ;;  %p260_p7 = scmp.lt.s32.totalorder %s254_s8, %s254_s8 }
   0xf   :  { %p261_p8 = por %p260_p7, %p259_p6 }
  0x11   :  { %p262_p9 = pnand %p261_p8, %p255_p5 }
  0x13   :  { %265 = shalt.err (!%p262_p9)
}
  0x14   :  { %s272_s9 = smov 128   ;;  %s273_s10 = smov 8  }
  0x15   :  { %36 = dma.hbm_to_vmem [thread:$0]  %s341_s1, 256, %s31_s27, [#allocation6], %s272_s9, %s272_s9, %s273_s10  }
  0x16   :  { %266 = dma.done.wait [#allocation4], 128  }
  0x17   :  { %267 = vsyncadd [#allocation4], 4294967168 }
  0x18   :  { %268 = dma.done.wait [#allocation6], 256  }
  0x19   :  { %269 = vsyncadd [#allocation6], 4294967040  ;;  %v274_v0 = vmov 0.0   ;;  %vm275_vm0 = vmmov 0   ;;  %v55_v1 = vld [vmem:[#allocation5 + $0x8] sm:$0xff]  ;;  %v54_v2 = vld [vmem:[#allocation5] sm:$0xff]  ;;  %v163_v27 = vlaneseq  ;;  %v187_v42 = vstv %s346_s6 }
  0x1a   :  { %207 = vmatprep.subr.mxu0 %v274_v0  ;;  %211 = vmatprep.mubr.msk.f32.mxu0 %vm275_vm0, %v274_v0  ;;  %v53_v3 = vld [vmem:[#allocation3] sm:$0xff]  ;;  %vm63_vm1 = vcmask 130048  }
  0x1b   :  { %208 = vmatpush3.msra.mxu0 %v55_v1  ;;  %v201_v4 = vld [vmem:[%s342_s2] ss:$0 sm:$0xff]  ;;  %v164_v28 = vshrl.u32 %v163_v27, 7  ;;  %v191_v45 = vand.u32 127, %v163_v27 }
  0x1c   :  { %209 = vmatprep.subr.mxu0 %v274_v0  ;;  %v155_v29 = vld [vmem:[%s343_s3] sm:$0x1] }
  0x1d   :  { %210 = vmatpush3.msra.mxu0 %v54_v2  ;;  %v165_v30 = vsub.s32 0, %v164_v28  ;;  %v159_v33 = vld [vmem:[%s344_s4] sm:$0x1]  ;;  %vm192_vm2 = vcmp.lt.s32.totalorder %v191_v45, 32 }
  0x1e   :  { %212 = vmatmul.mubr.msk.f32.vlgmr.msra.gmra.mxu0 %vm63_vm1, %v53_v3  ;;  %v203_v39 = vld [vmem:[%s345_s5] ss:$0 sm:$0xff] }
  0xde   :  { %v133_v5 = vpop.f32.mrf.mxu0 }
  0xdf   :  { %v134_v6 = vadd.f32 %v201_v4, %v133_v5 }
  0xe0   :  { %v213_v7 = vpop.f32.mrf.mxu0 }
  0xe1   :  { %220 = vtanh.f32 %v134_v6 }
  0xee   :  { %v221_v8 = vpop.eup %220 }
  0xef   :  { %v138_v9 = vrot.slane %v221_v8, 4  ;;  %v145_v10 = vmul.f32 %v221_v8, %v221_v8 }
  0xf1   :  { %v139_v11 = vadd.f32 %v221_v8, %v138_v9  ;;  %v146_v12 = vrot.slane %v145_v10, 4 }
  0xf3   :  { %v140_v13 = vrot.slane %v139_v11, 2  ;;  %v147_v14 = vadd.f32 %v146_v12, %v145_v10 }
  0xf5   :  { %v141_v15 = vadd.f32 %v140_v13, %v139_v11  ;;  %v148_v16 = vrot.slane %v147_v14, 2 }
  0xf7   :  { %v142_v17 = vrot.slane %v141_v15, 1  ;;  %v149_v18 = vadd.f32 %v148_v16, %v147_v14 }
  0xf9   :  { %v143_v19 = vadd.f32 %v142_v17, %v141_v15  ;;  %v150_v20 = vrot.slane %v149_v18, 1 }
  0xfb   :  { %v144_v21 = vmul.f32 0.125, %v143_v19  ;;  %v151_v22 = vadd.f32 %v150_v20, %v149_v18 }
  0xfd   :  { %v152_v23 = vmul.f32 0.125, %v151_v22  ;;  %v153_v24 = vmul.f32 %v144_v21, %v144_v21 }
  0xff   :  { %v154_v25 = vsub.f32 %v152_v23, %v153_v24 }
 0x101   :  { %v156_v26 = vadd.f32 1e-05, %v154_v25 }
 0x103   :  { %222 = vrsqrt.f32 %v156_v26 }
 0x110   :  { %v223_v31 = vpop.eup %222 }
 0x111   :  { %v158_v32 = vmul.f32 %v223_v31, %v155_v29 }
 0x113   :  { %v160_v34 = vmul.f32 %v158_v32, %v144_v21  ;;  %v166_v35 = vrot.slane %v158_v32, %v165_v30 }
 0x115   :  { %v161_v36 = vsub.f32 %v159_v33, %v160_v34  ;;  %v168_v37 = vmul.f32 %v221_v8, %v166_v35 }
 0x117   :  { %v173_v38 = vrot.slane %v161_v36, %v165_v30 }
 0x119   :  { %v175_v40 = vadd.f32 %v173_v38, %v168_v37 }
 0x11b   :  { %v183_v41 = vmul.f32 %v203_v39, %v175_v40 }
 0x11d   :  { %184 = vadd.xlane.f32.xlu0 %v183_v41 }
 0x1a6   :  { %v185_v43 = vpop.xlane.xlu0 %184 }
 0x1a7   :  { %v188_v44 = vadd.f32 %v187_v42, %v185_v43 }
 0x1a9   :  { %224 = vtanh.f32 %v188_v44 }
 0x1b6   :  { %v225_v46 = vpop.eup %224 }
 0x1b7   :  { %v193_v47 = vsel %vm192_vm2, %v175_v40, %v225_v46 }
 0x1b8   :  { %194 = vst [vmem:[%s347_s7] sm:$0xff] %v193_v47 }
 0x1b9   :  { %199 = vsyncpa [#allocation4], 1 }
 0x1ba   :  { %200 = vsyncpa [#allocation6], 1 }

</bundles_post_ra>
